<compile_context>
chip_gen: v7x
topology: tpu7x:2x2x1
jax: 0.10.0
libtpu: 0.0.40
codegen_flags: <defaults>
</compile_context>

<pallas_src>
import math
import functools

import jax
import jax.numpy as jnp
from jax import lax
from jax.experimental import pallas as pl
from jax.experimental.pallas import tpu as pltpu


# ----------------------------- opt (synthetic) -----------------------------
class Opt:
    mse_loss = False          # -> FocalLoss for heatmap
    reg_loss = 'l1'           # -> RegL1Loss
    dense_wh = False
    norm_wh = False
    cat_spec_wh = False
    reg_offset = True
    hm_weight = 1.0
    wh_weight = 0.1
    off_weight = 1.0
    id_weight = 1.0
    num_stacks = 1
    train_only_det = 0
    id_loss = 'ce'            # cross entropy (not focal)
    multi_loss = 'uncertainty'
    reid_dim = 32             # emb_dim
    nID = 64


# ======================= focal (heat-map) loss kernel =======================
_FOCAL_MAX_ROWS = 1024        # row tile (multiple of 8); W stays the lane dim
_LOG_EPS = math.log(1e-4)
_LOG_1ME = math.log(1.0 - 1e-4)


def _focal_partial_kernel(x_ref, gt_ref, part_ref, *, total_rows, tile_rows):
    """Per-tile partial sums: [sum(pos_loss), sum(neg_loss), num_pos]."""
    i = pl.program_id(0)
    row = lax.broadcasted_iota(jnp.int32, x_ref.shape, 0) + i * tile_rows
    valid = row < total_rows                      # ragged last tile handled here
    x = jnp.where(valid, x_ref[...].astype(jnp.float32), 0.0)
    gt = jnp.where(valid, gt_ref[...], 2.0)       # 2.0 -> neither pos nor neg

    # log-sigmoid identities: one exp, one log, one (approx, ~free) reciprocal.
    e = jnp.exp(-jnp.abs(x))                               # EUP
    inv = pl.reciprocal(1.0 + e, approx=True)              # EUP (approx)
    nonneg = x >= 0.0
    p = jnp.clip(jnp.where(nonneg, inv, e * inv), 1e-4, 1.0 - 1e-4)
    log1pe = jnp.log(1.0 + e)                              # EUP
    logp = jnp.clip(jnp.where(nonneg, -log1pe, x - log1pe), _LOG_EPS, _LOG_1ME)
    log1mp = jnp.clip(jnp.where(nonneg, -x - log1pe, -log1pe), _LOG_EPS, _LOG_1ME)

    pos = (gt == 1.0).astype(jnp.float32)
    neg = (gt < 1.0).astype(jnp.float32)
    neg_w = (1.0 - gt) ** 4
    one_m_p = 1.0 - p
    pos_loss = logp * one_m_p * one_m_p * pos
    neg_loss = log1mp * p * p * neg_w * neg

    ps = jnp.sum(pos_loss)
    ns = jnp.sum(neg_loss)
    npos = jnp.sum(pos)
    lane = lax.broadcasted_iota(jnp.int32, (1, 3), 1)
    part_ref[...] = (jnp.where(lane == 0, ps, 0.0)
                     + jnp.where(lane == 1, ns, 0.0)
                     + jnp.where(lane == 2, npos, 0.0))


def focal_loss(hm_logits_nchw, hm_gt_nchw):
    """CenterNet focal loss over the whole heat map (any NCHW shape)."""
    shp = hm_logits_nchw.shape
    W = shp[-1]
    rows = math.prod(shp[:-1])
    # free reshapes (merge of leading dims, no data movement, no cast/pad copy)
    x2 = hm_logits_nchw.reshape(rows, W)
    g2 = hm_gt_nchw.astype(jnp.float32).reshape(rows, W)

    tr = rows if rows <= _FOCAL_MAX_ROWS else _FOCAL_MAX_ROWS
    n_tiles = (rows + tr - 1) // tr
    kern = functools.partial(_focal_partial_kernel, total_rows=rows, tile_rows=tr)

    parts = pl.pallas_call(
        kern,
        grid=(n_tiles,),
        in_specs=[pl.BlockSpec((tr, W), lambda i: (i, 0)),
                  pl.BlockSpec((tr, W), lambda i: (i, 0))],
        out_specs=pl.BlockSpec((1, 3), lambda i: (i, 0)),
        out_shape=jax.ShapeDtypeStruct((n_tiles, 3), jnp.float32),
        compiler_params=pltpu.CompilerParams(
            dimension_semantics=("parallel",),          # both TCs on v7x
            vmem_limit_bytes=32 * 1024 * 1024),
    )(x2, g2)

    ps = jnp.sum(parts[:, 0])
    ns = jnp.sum(parts[:, 1])
    npos = jnp.sum(parts[:, 2])
    return jnp.where(npos > 0.0, -(ps + ns) / jnp.maximum(npos, 1.0), -ns)


# ========= fused gather kernel: RegL1(wh) + RegL1(offset) + ID embedding =========
def _gather_reg_id_kernel(ind_ref, wh_ref, reg_ref, id_ref,
                          mask_ref, twh_ref, treg_ref,
                          part_ref, emb_ref, acc_ref,
                          *, width, emb_scale):
    b = pl.program_id(0)
    k = pl.program_id(1)
    nk = pl.num_programs(1)

    @pl.when(k == 0)
    def _init():
        acc_ref[0] = 0.0      # sum mask * |pred_wh - tgt_wh|_1   (this b)
        acc_ref[1] = 0.0      # sum mask * |pred_reg - tgt_reg|_1 (this b)
        acc_ref[2] = 0.0      # sum mask                          (this b)

    idx = ind_ref[b, k]
    x = idx % width
    m = mask_ref[b, k]

    # one-hot over the W lanes of the DMA'd image row
    oh = (lax.broadcasted_iota(jnp.int32, (1, width), 1) == x).astype(jnp.float32)

    # --- wh / offset regression: one (2,W) masked lane-reduce per head ---
    gw = jnp.sum(wh_ref[0, :, 0, :] * oh, axis=1, keepdims=True)    # (2,1)
    gr = jnp.sum(reg_ref[0, :, 0, :] * oh, axis=1, keepdims=True)   # (2,1)
    r2 = lax.broadcasted_iota(jnp.int32, (2, 1), 0)
    twh = jnp.where(r2 == 0, twh_ref[b, 2 * k], twh_ref[b, 2 * k + 1])
    trg = jnp.where(r2 == 0, treg_ref[b, 2 * k], treg_ref[b, 2 * k + 1])
    l1_wh = jnp.sum(jnp.abs(gw - twh))
    l1_rg = jnp.sum(jnp.abs(gr - trg))
    acc_ref[0] = acc_ref[0] + m * l1_wh
    acc_ref[1] = acc_ref[1] + m * l1_rg
    acc_ref[2] = acc_ref[2] + m

    # --- ID embedding: gather via (1,W)x(W,E) dot, F.normalize (rsqrt), scale ---
    id_row = id_ref[0, :, 0, :]                                    # (E, W)
    emb = lax.dot_general(oh, id_row, (((1,), (1,)), ((), ())),
                          preferred_element_type=jnp.float32)      # (1, E)
    n2 = jnp.sum(emb * emb)
    # emb_scale / max(||emb||, 1e-12) expressed with rsqrt (EUP slot, ~free)
    coef = emb_scale * lax.rsqrt(jnp.maximum(n2, 1e-24))
    emb_ref[0, pl.ds(k, 1), :] = (emb * coef).astype(jnp.bfloat16)

    @pl.when(k == nk - 1)
    def _fin():
        lane = lax.broadcasted_iota(jnp.int32, (1, 3), 1)
        part_ref[...] = (jnp.where(lane == 0, acc_ref[0], 0.0)
                         + jnp.where(lane == 1, acc_ref[1], 0.0)
                         + jnp.where(lane == 2, acc_ref[2], 0.0))


def reg_and_id_gather(wh_nchw, reg_nchw, id_nchw, reg_mask, ind,
                      wh_target, reg_target, emb_scale):
    """Returns (wh_loss, off_loss, normalized+scaled id embeddings (B*K, E) bf16)."""
    B, _, H, W = wh_nchw.shape
    E = id_nchw.shape[1]
    K = ind.shape[1]

    kern = functools.partial(_gather_reg_id_kernel, width=W,
                             emb_scale=float(emb_scale))

    def row_map(b, k, ind_ref):          # DMA only NCHW image row y = ind // W
        return (b, 0, ind_ref[b, k] // W, 0)

    grid_spec = pltpu.PrefetchScalarGridSpec(
        num_scalar_prefetch=1,
        grid=(B, K),
        in_specs=[
            pl.BlockSpec((1, 2, 1, W), row_map),                 # wh head (NCHW)
            pl.BlockSpec((1, 2, 1, W), row_map),                 # reg head (NCHW)
            pl.BlockSpec((1, E, 1, W), row_map),                 # id head (NCHW)
            pl.BlockSpec(memory_space=pltpu.MemorySpace.SMEM),   # reg_mask (B, K)
            pl.BlockSpec(memory_space=pltpu.MemorySpace.SMEM),   # wh target (B, 2K)
            pl.BlockSpec(memory_space=pltpu.MemorySpace.SMEM),   # reg target (B, 2K)
        ],
        out_specs=[
            pl.BlockSpec((1, 3), lambda b, k, ind_ref: (b, 0)),        # per-b partials
            pl.BlockSpec((1, K, E), lambda b, k, ind_ref: (b, 0, 0)),  # embeddings
        ],
        scratch_shapes=[pltpu.SMEM((3,), jnp.float32)],
    )

    parts, emb = pl.pallas_call(
        kern,
        grid_spec=grid_spec,
        out_shape=[jax.ShapeDtypeStruct((B, 3), jnp.float32),
                   jax.ShapeDtypeStruct((B, K, E), jnp.bfloat16)],
        compiler_params=pltpu.CompilerParams(
            dimension_semantics=("parallel", "arbitrary")),      # B sharded on v7x
    )(ind.astype(jnp.int32),
      wh_nchw.astype(jnp.float32), reg_nchw.astype(jnp.float32),
      id_nchw.astype(jnp.float32),
      reg_mask.astype(jnp.float32),
      wh_target.astype(jnp.float32).reshape(B, 2 * K),
      reg_target.astype(jnp.float32).reshape(B, 2 * K))

    mask_sum = jnp.sum(parts[:, 2])
    denom = mask_sum * 2.0 + 1e-4        # torch: mask expanded over C=2 channels
    wh_l = jnp.sum(parts[:, 0]) / denom
    off_l = jnp.sum(parts[:, 1]) / denom
    # TODO(synk): rows with reg_mask==0 carry embeddings gathered from ind=0;
    # they are excluded from the CE loss (valid mask) but should not be reused.
    return wh_l, off_l, emb.reshape(B * K, E)


# ============== ID classifier + cross entropy (online logsumexp) ==============
def _id_ce_kernel(emb_ref, w_ref, b_ref, tgt_ref, valid_ref, out_ref,
                  m_ref, l_ref, t_ref, *, tile_n):
    j = pl.program_id(1)

    @pl.when(j == 0)
    def _init():
        m_ref[...] = jnp.full_like(m_ref, -1e30)
        l_ref[...] = jnp.zeros_like(l_ref)
        t_ref[...] = jnp.zeros_like(t_ref)

    # bf16 operands feed the MXU at full rate; accumulate in f32.
    logits = jnp.dot(emb_ref[...], w_ref[...],
                     preferred_element_type=jnp.float32) + b_ref[...]
    m_prev = m_ref[...]
    m_new = jnp.maximum(m_prev, jnp.max(logits, axis=1, keepdims=True))
    l_ref[...] = (l_ref[...] * jnp.exp(m_prev - m_new)
                  + jnp.sum(jnp.exp(logits - m_new), axis=1, keepdims=True))
    m_ref[...] = m_new
    col = lax.broadcasted_iota(jnp.int32, logits.shape, 1) + j * tile_n
    t_ref[...] = t_ref[...] + jnp.sum(
        jnp.where(col == tgt_ref[...], logits, 0.0), axis=1, keepdims=True)

    @pl.when(j == pl.num_programs(1) - 1)
    def _fin():
        valid = valid_ref[...]
        per_row = jnp.where(valid > 0.0,
                            m_ref[...] + jnp.log(l_ref[...]) - t_ref[...], 0.0)
        lane = lax.broadcasted_iota(jnp.int32, (1, 2), 1)
        out_ref[...] = (jnp.where(lane == 0, jnp.sum(per_row), 0.0)
                        + jnp.where(lane == 1, jnp.sum(valid), 0.0))


def id_ce_loss(emb, tgt, valid, cls_w_t, cls_b_pad):
    R0, E = emb.shape
    n_id_pad = cls_w_t.shape[1]

    # Split R into row blocks: leading "parallel" axis -> both v7x TCs work and
    # per-core logits VMEM stays small; on v5e/v6e it is just a benign loop.
    TR = 256 if R0 > 512 else ((R0 + 15) // 16) * 16
    R_pad = ((R0 + TR - 1) // TR) * TR
    if R_pad != R0:
        emb = jnp.pad(emb, ((0, R_pad - R0), (0, 0)))
        tgt = jnp.pad(tgt, ((0, R_pad - R0), (0, 0)))
        valid = jnp.pad(valid, ((0, R_pad - R0), (0, 0)))

    # nID tile: biggest power-of-two divisor of the padded class count (<=4096)
    # to amortize per-grid-step overhead; weight stream is a dense bf16 slab.
    tile_n = n_id_pad
    for cand in (4096, 2048, 1024, 512, 256, 128):
        if n_id_pad % cand == 0:
            tile_n = cand
            break
    tile_n = min(tile_n, n_id_pad)

    kern = functools.partial(_id_ce_kernel, tile_n=tile_n)
    parts = pl.pallas_call(
        kern,
        grid=(R_pad // TR, n_id_pad // tile_n),
        in_specs=[
            pl.BlockSpec((TR, E), lambda r, j: (r, 0)),        # embeddings (bf16)
            pl.BlockSpec((E, tile_n), lambda r, j: (0, j)),    # classifier weight tile
            pl.BlockSpec((1, tile_n), lambda r, j: (0, j)),    # classifier bias tile
            pl.BlockSpec((TR, 1), lambda r, j: (r, 0)),        # targets
            pl.BlockSpec((TR, 1), lambda r, j: (r, 0)),        # valid mask
        ],
        out_specs=pl.BlockSpec((1, 2), lambda r, j: (r, 0)),   # per-row-block (sum, cnt)
        out_shape=jax.ShapeDtypeStruct((R_pad // TR, 2), jnp.float32),
        scratch_shapes=[pltpu.VMEM((TR, 1), jnp.float32)] * 3,  # m, l, target-logit
        compiler_params=pltpu.CompilerParams(
            dimension_semantics=("parallel", "arbitrary"),
            vmem_limit_bytes=32 * 1024 * 1024),
    )(emb, cls_w_t, cls_b_pad, tgt, valid)

    total = jnp.sum(parts[:, 0])
    cnt = jnp.sum(parts[:, 1])
    # TODO(synk): PyTorch CE returns NaN when every target is ignored; we return 0.
    return total / jnp.maximum(cnt, 1.0)


# --------------------------------- module ---------------------------------
class MotLossPallas:
    """JAX / Pallas reimplementation of MotLoss.forward (train_only_det == 0 path)."""

    def __init__(self, opt, key):
        self.opt = opt
        self.emb_dim = opt.reid_dim
        self.nID = opt.nID
        k_w, _ = jax.random.split(key)
        # deterministic synthetic init of classifier (id_loss != 'focal' path)
        self.cls_w = 0.01 * jax.random.normal(k_w, (self.nID, self.emb_dim), jnp.float32)
        self.cls_b = jnp.zeros((self.nID,), jnp.float32)
        # MXU-friendly classifier: pre-transposed (E, nID), nID padded to 128 and
        # cast to bf16; padded bias -1e9 removes padded classes from the LSE.
        n_id_pad = ((self.nID + 127) // 128) * 128
        w_t = jnp.zeros((self.emb_dim, n_id_pad), jnp.float32)
        w_t = w_t.at[:, :self.nID].set(self.cls_w.T)
        self.cls_w_t = w_t.astype(jnp.bfloat16)
        b_pad = jnp.full((1, n_id_pad), -1e9, jnp.float32)
        self.cls_b_pad = b_pad.at[0, :self.nID].set(self.cls_b)
        self.emb_scale = math.sqrt(2) * math.log(self.nID - 1)
        self.s_det = jnp.float32(-1.85)
        self.s_id = jnp.float32(-1.05)

    def __call__(self, outputs, batch):
        opt = self.opt
        hm_loss = jnp.float32(0.0)
        wh_loss = jnp.float32(0.0)
        off_loss = jnp.float32(0.0)
        id_loss = jnp.float32(0.0)

        for s in range(opt.num_stacks):
            output = outputs[s]
            # not mse_loss -> _sigmoid fused inside the focal kernel
            hm_loss = hm_loss + focal_loss(output['hm'], batch['hm']) / opt.num_stacks

            # fused kernel: shared index gather for wh-L1, offset-L1 and the id head
            wh_l, off_l, emb = reg_and_id_gather(
                output['wh'], output['reg'], output['id'],
                batch['reg_mask'], batch['ind'],
                batch['wh'], batch['reg'], self.emb_scale)
            if opt.wh_weight > 0:
                wh_loss = wh_loss + wh_l / opt.num_stacks
            if opt.reg_offset and opt.off_weight > 0:
                off_loss = off_loss + off_l / opt.num_stacks
            if opt.train_only_det == 1:
                continue
            if opt.id_weight > 0:
                B, K = batch['ind'].shape
                valid = ((batch['reg_mask'] > 0) & (batch['ids'] != -1))
                valid = valid.astype(jnp.float32).reshape(B * K, 1)
                tgt = batch['ids'].astype(jnp.int32).reshape(B * K, 1)
                id_loss = id_loss + id_ce_loss(emb, tgt, valid,
                                               self.cls_w_t, self.cls_b_pad)

        det_loss = (opt.hm_weight * hm_loss
                    + opt.wh_weight * wh_loss
                    + opt.off_weight * off_loss)

        if opt.multi_loss == 'uncertainty':
            loss = (jnp.exp(-self.s_det) * det_loss
                    + jnp.exp(-self.s_id) * id_loss
                    + (self.s_det + self.s_id))
            loss = loss * 0.5
        else:
            loss = det_loss + 0.1 * id_loss

        loss_stats = {'loss': loss, 'hm_loss': hm_loss, 'wh_loss': wh_loss,
                      'off_loss': off_loss, 'id_loss': id_loss}
        return loss, loss_stats, float(self.s_det), float(self.s_id), (self.cls_w, self.cls_b)


# ------------------------------ example / smoke test ------------------------------
if __name__ == "__main__":
    opt = Opt()
    B, H, W = 2, 16, 16
    K = 8                      # max objects per image
    E = opt.reid_dim

    key = jax.random.PRNGKey(0)
    ks = jax.random.split(key, 12)

    # model outputs (NCHW, like PyTorch conv heads)
    outputs = [{
        'hm':  jax.random.normal(ks[0], (B, 1, H, W), jnp.float32),
        'wh':  jax.random.normal(ks[1], (B, 2, H, W), jnp.float32),
        'reg': jax.random.normal(ks[2], (B, 2, H, W), jnp.float32),
        'id':  jax.random.normal(ks[3], (B, E, H, W), jnp.float32),
    }]

    # ground-truth batch
    hm_gt = jax.random.uniform(ks[4], (B, 1, H, W), jnp.float32) * 0.9
    hm_gt = hm_gt.at[0, 0, 4, 4].set(1.0)
    hm_gt = hm_gt.at[0, 0, 10, 7].set(1.0)
    hm_gt = hm_gt.at[1, 0, 8, 8].set(1.0)

    ind = jnp.array([[4 * W + 4, 10 * W + 7, 33, 0, 0, 0, 0, 0],
                     [8 * W + 8, 17, 0, 0, 0, 0, 0, 0]], jnp.int32)
    reg_mask = jnp.array([[1, 1, 1, 0, 0, 0, 0, 0],
                          [1, 1, 0, 0, 0, 0, 0, 0]], jnp.float32)
    ids = jnp.array([[3, 17, 5, -1, -1, -1, -1, -1],
                     [42, 0, -1, -1, -1, -1, -1, -1]], jnp.int32)

    batch = {
        'hm': hm_gt,
        'reg_mask': reg_mask,
        'ind': ind,
        'wh': jax.random.uniform(ks[5], (B, K, 2), jnp.float32) * 4.0,
        'reg': jax.random.uniform(ks[6], (B, K, 2), jnp.float32),
        'ids': ids,
        'input': jnp.zeros((B, 3, 4 * H, 4 * W), jnp.float32),
    }

    mot_loss = MotLossPallas(opt, ks[7])
    loss, loss_stats, s_det, s_id, _ = mot_loss(outputs, batch)
    jax.block_until_ready(loss)
    print("KERNEL_OK")
</pallas_src>

<mosaic_0001>
module attributes {stable_mosaic.version = 11 : i64} {
  func.func @_focal_partial_kernel(%arg0: i32, %arg1: memref<32x16xf32, #tpu.memory_space<vmem>>, %arg2: memref<32x16xf32, #tpu.memory_space<vmem>>, %arg3: memref<1x3xf32, #tpu.memory_space<vmem>>) attributes {dimension_semantics = [#tpu.dimension_semantics<parallel>], iteration_bounds = array<i64: 1>, scalar_prefetch = 0 : i64, scratch_operands = 0 : i64, tpu.core_type = #tpu.core_type<tc>, window_params = [{transform_indices = @transform_0, window_bounds = array<i64: 32, 16>}, {transform_indices = @transform_1, window_bounds = array<i64: 32, 16>}, {transform_indices = @transform_2, window_bounds = array<i64: 1, 3>}]} {
    %0 = tpu.iota {dimensions = array<i32: 0>} : vector<32x16xi32>
    %c32_i32 = arith.constant 32 : i32
    %1 = arith.muli %arg0, %c32_i32 : i32
    %2 = vector.broadcast %1 : i32 to vector<32x16xi32>
    %3 = arith.addi %0, %2 : vector<32x16xi32>
    %c32_i32_0 = arith.constant 32 : i32
    %4 = vector.broadcast %c32_i32_0 : i32 to vector<32x16xi32>
    %5 = arith.cmpi slt, %3, %4 : vector<32x16xi32>
    %c0 = arith.constant 0 : index
    %c0_1 = arith.constant 0 : index
    %6 = vector.load %arg1[%c0, %c0_1] : memref<32x16xf32, #tpu.memory_space<vmem>>, vector<32x16xf32>
    %cst = arith.constant 0.000000e+00 : f32
    %7 = vector.broadcast %cst : f32 to vector<32x16xf32>
    %8 = arith.select %5, %6, %7 : vector<32x16xi1>, vector<32x16xf32>
    %c0_2 = arith.constant 0 : index
    %c0_3 = arith.constant 0 : index
    %9 = vector.load %arg2[%c0_2, %c0_3] : memref<32x16xf32, #tpu.memory_space<vmem>>, vector<32x16xf32>
    %cst_4 = arith.constant 2.000000e+00 : f32
    %10 = vector.broadcast %cst_4 : f32 to vector<32x16xf32>
    %11 = arith.select %5, %9, %10 : vector<32x16xi1>, vector<32x16xf32>
    %12 = math.absf %8 : vector<32x16xf32>
    %cst_5 = arith.constant 0.000000e+00 : f32
    %13 = vector.broadcast %cst_5 : f32 to vector<32x16xf32>
    %14 = arith.subf %13, %12 : vector<32x16xf32>
    %15 = math.exp %14 : vector<32x16xf32>
    %cst_6 = arith.constant 1.000000e+00 : f32
    %16 = vector.broadcast %cst_6 : f32 to vector<32x16xf32>
    %17 = arith.addf %16, %15 : vector<32x16xf32>
    %18 = tpu.reciprocal %17 {approx = true} : vector<32x16xf32> -> vector<32x16xf32>
    %cst_7 = arith.constant 0.000000e+00 : f32
    %19 = vector.broadcast %cst_7 : f32 to vector<32x16xf32>
    %20 = arith.cmpf oge, %8, %19 : vector<32x16xf32>
    %21 = arith.mulf %15, %18 : vector<32x16xf32>
    %22 = arith.select %20, %18, %21 : vector<32x16xi1>, vector<32x16xf32>
    %cst_8 = arith.constant 9.99999974E-5 : f32
    %cst_9 = arith.constant 0.999899983 : f32
    %23 = vector.broadcast %cst_8 : f32 to vector<32x16xf32>
    %24 = arith.maximumf %23, %22 : vector<32x16xf32>
    %25 = vector.broadcast %cst_9 : f32 to vector<32x16xf32>
    %26 = arith.minimumf %25, %24 : vector<32x16xf32>
    %cst_10 = arith.constant 1.000000e+00 : f32
    %27 = vector.broadcast %cst_10 : f32 to vector<32x16xf32>
    %28 = arith.addf %27, %15 : vector<32x16xf32>
    %29 = math.log %28 : vector<32x16xf32>
    %cst_11 = arith.constant 0.000000e+00 : f32
    %30 = vector.broadcast %cst_11 : f32 to vector<32x16xf32>
    %31 = arith.subf %30, %29 : vector<32x16xf32>
    %32 = arith.subf %8, %29 : vector<32x16xf32>
    %33 = arith.select %20, %31, %32 : vector<32x16xi1>, vector<32x16xf32>
    %cst_12 = arith.constant -9.21034049 : f32
    %cst_13 = arith.constant -1.000050e-04 : f32
    %34 = vector.broadcast %cst_12 : f32 to vector<32x16xf32>
    %35 = arith.maximumf %34, %33 : vector<32x16xf32>
    %36 = vector.broadcast %cst_13 : f32 to vector<32x16xf32>
    %37 = arith.minimumf %36, %35 : vector<32x16xf32>
    %cst_14 = arith.constant 0.000000e+00 : f32
    %38 = vector.broadcast %cst_14 : f32 to vector<32x16xf32>
    %39 = arith.subf %38, %8 : vector<32x16xf32>
    %40 = arith.subf %39, %29 : vector<32x16xf32>
    %cst_15 = arith.constant 0.000000e+00 : f32
    %41 = vector.broadcast %cst_15 : f32 to vector<32x16xf32>
    %42 = arith.subf %41, %29 : vector<32x16xf32>
    %43 = arith.select %20, %40, %42 : vector<32x16xi1>, vector<32x16xf32>
    %cst_16 = arith.constant -9.21034049 : f32
    %cst_17 = arith.constant -1.000050e-04 : f32
    %44 = vector.broadcast %cst_16 : f32 to vector<32x16xf32>
    %45 = arith.maximumf %44, %43 : vector<32x16xf32>
    %46 = vector.broadcast %cst_17 : f32 to vector<32x16xf32>
    %47 = arith.minimumf %46, %45 : vector<32x16xf32>
    %cst_18 = arith.constant 1.000000e+00 : f32
    %48 = vector.broadcast %cst_18 : f32 to vector<32x16xf32>
    %49 = arith.cmpf oeq, %11, %48 : vector<32x16xf32>
    %50 = arith.extui %49 : vector<32x16xi1> to vector<32x16xi32>
    %51 = arith.sitofp %50 : vector<32x16xi32> to vector<32x16xf32>
    %cst_19 = arith.constant 1.000000e+00 : f32
    %52 = vector.broadcast %cst_19 : f32 to vector<32x16xf32>
    %53 = arith.cmpf olt, %11, %52 : vector<32x16xf32>
    %54 = arith.extui %53 : vector<32x16xi1> to vector<32x16xi32>
    %55 = arith.sitofp %54 : vector<32x16xi32> to vector<32x16xf32>
    %cst_20 = arith.constant 1.000000e+00 : f32
    %56 = vector.broadcast %cst_20 : f32 to vector<32x16xf32>
    %57 = arith.subf %56, %11 : vector<32x16xf32>
    %58 = arith.mulf %57, %57 : vector<32x16xf32>
    %59 = arith.mulf %58, %58 : vector<32x16xf32>
    %cst_21 = arith.constant 1.000000e+00 : f32
    %60 = vector.broadcast %cst_21 : f32 to vector<32x16xf32>
    %61 = arith.subf %60, %26 : vector<32x16xf32>
    %62 = arith.mulf %37, %61 : vector<32x16xf32>
    %63 = arith.mulf %62, %61 : vector<32x16xf32>
    %64 = arith.mulf %63, %51 : vector<32x16xf32>
    %65 = arith.mulf %47, %26 : vector<32x16xf32>
    %66 = arith.mulf %65, %26 : vector<32x16xf32>
    %67 = arith.mulf %66, %59 : vector<32x16xf32>
    %68 = arith.mulf %67, %55 : vector<32x16xf32>
    %69 = vector.shape_cast %64 : vector<32x16xf32> to vector<1x32x16xf32>
    %cst_22 = arith.constant dense<0.000000e+00> : vector<1xf32>
    %70 = vector.multi_reduction <add>, %69, %cst_22 [1, 2] : vector<1x32x16xf32> to vector<1xf32>
    %71 = vector.shape_cast %70 : vector<1xf32> to vector<1x1x1xf32>
    %72 = vector.extract %71[0, 0, 0] : f32 from vector<1x1x1xf32>
    %73 = vector.shape_cast %68 : vector<32x16xf32> to vector<1x32x16xf32>
    %cst_23 = arith.constant dense<0.000000e+00> : vector<1xf32>
    %74 = vector.multi_reduction <add>, %73, %cst_23 [1, 2] : vector<1x32x16xf32> to vector<1xf32>
    %75 = vector.shape_cast %74 : vector<1xf32> to vector<1x1x1xf32>
    %76 = vector.extract %75[0, 0, 0] : f32 from vector<1x1x1xf32>
    %77 = vector.shape_cast %51 : vector<32x16xf32> to vector<1x32x16xf32>
    %cst_24 = arith.constant dense<0.000000e+00> : vector<1xf32>
    %78 = vector.multi_reduction <add>, %77, %cst_24 [1, 2] : vector<1x32x16xf32> to vector<1xf32>
    %79 = vector.shape_cast %78 : vector<1xf32> to vector<1x1x1xf32>
    %80 = vector.extract %79[0, 0, 0] : f32 from vector<1x1x1xf32>
    %81 = tpu.iota {dimensions = array<i32: 1>} : vector<1x3xi32>
    %c0_i32 = arith.constant 0 : i32
    %82 = vector.broadcast %c0_i32 : i32 to vector<1x3xi32>
    %83 = arith.cmpi eq, %81, %82 : vector<1x3xi32>
    %cst_25 = arith.constant 0.000000e+00 : f32
    %84 = vector.broadcast %72 : f32 to vector<1x3xf32>
    %85 = vector.broadcast %cst_25 : f32 to vector<1x3xf32>
    %86 = arith.select %83, %84, %85 : vector<1x3xi1>, vector<1x3xf32>
    %c1_i32 = arith.constant 1 : i32
    %87 = vector.broadcast %c1_i32 : i32 to vector<1x3xi32>
    %88 = arith.cmpi eq, %81, %87 : vector<1x3xi32>
    %cst_26 = arith.constant 0.000000e+00 : f32
    %89 = vector.broadcast %76 : f32 to vector<1x3xf32>
    %90 = vector.broadcast %cst_26 : f32 to vector<1x3xf32>
    %91 = arith.select %88, %89, %90 : vector<1x3xi1>, vector<1x3xf32>
    %92 = arith.addf %86, %91 : vector<1x3xf32>
    %c2_i32 = arith.constant 2 : i32
    %93 = vector.broadcast %c2_i32 : i32 to vector<1x3xi32>
    %94 = arith.cmpi eq, %81, %93 : vector<1x3xi32>
    %cst_27 = arith.constant 0.000000e+00 : f32
    %95 = vector.broadcast %80 : f32 to vector<1x3xf32>
    %96 = vector.broadcast %cst_27 : f32 to vector<1x3xf32>
    %97 = arith.select %94, %95, %96 : vector<1x3xi1>, vector<1x3xf32>
    %98 = arith.addf %92, %97 : vector<1x3xf32>
    %c0_28 = arith.constant 0 : index
    %c0_29 = arith.constant 0 : index
    %99 = vector.load %arg3[%c0_28, %c0_29] : memref<1x3xf32, #tpu.memory_space<vmem>>, vector<1x3xf32>
    tpu.vector_store %arg3[%c0_28, %c0_29], %98 {strides = array<i32>} : memref<1x3xf32, #tpu.memory_space<vmem>>, vector<1x3xf32>,
    return
  }
  func.func @transform_0(%arg0: i32) -> (i32, i32) {
    %c0_i32 = arith.constant 0 : i32
    %c0_i32_0 = arith.constant 0 : i32
    return %arg0, %c0_i32 : i32, i32
  }
  func.func @transform_1(%arg0: i32) -> (i32, i32) {
    %c0_i32 = arith.constant 0 : i32
    %c0_i32_0 = arith.constant 0 : i32
    return %arg0, %c0_i32 : i32, i32
  }
  func.func @transform_2(%arg0: i32) -> (i32, i32) {
    %c0_i32 = arith.constant 0 : i32
    %c0_i32_0 = arith.constant 0 : i32
    return %arg0, %c0_i32 : i32, i32
  }
}

</mosaic_0001>

<bundles_post_ra>
// kernel: tpu_custom_call.1
= control target key start
LH: loop header
LB: loop body
LE: loop exit
PB: predicated region body
PF: predicated region fallthrough
CT: control target
= control target key end

     0   :  { %vm203_vm3 = vcmask 130048   ;;  %v345_v4 = vmov 0.0   ;;  %s544_s0 = inlined_call_operand.vmem [shape: f32[32,16], index: 0, kind: input, shape index: {}]   ;;  %s545_s1 = inlined_call_operand.vmem [shape: f32[32,16], index: 1, kind: input, shape index: {}]   ;;  %s546_s2 = inlined_call_operand.hbm [shape: f32[1,3], index: 2, kind: output, shape index: {}]  }
   0x1   :  { %v365_v0 = vld [vmem:[%s545_s1] sm:$0xff]  ;;  %v370_v1 = vld [vmem:[%s545_s1 + $0x8] sm:$0xff]  ;;  %v375_v2 = vld [vmem:[%s545_s1 + $0x10] sm:$0xff] }
   0x2   :  { %v380_v3 = vld [vmem:[%s545_s1 + $0x18] sm:$0xff]  ;;  %vm135_vm0 = vcmp.eq.f32.partialorder %v365_v0, 1.0  ;;  %vm136_vm1 = vcmp.eq.f32.partialorder %v370_v1, 1.0  ;;  %vm137_vm2 = vcmp.eq.f32.partialorder %v375_v2, 1.0  ;;  %v398_v8 = vld [vmem:[%s544_s0] sm:$0xff]  ;;  %v403_v9 = vld [vmem:[%s544_s0 + $0x8] sm:$0xff] }
   0x3   :  { %vm138_vm4 = vcmp.eq.f32.partialorder %v380_v3, 1.0  ;;  %v387_v5 = vsel %vm135_vm0, 1.0, %v345_v4  ;;  %v390_v6 = vsel %vm136_vm1, 1.0, %v345_v4  ;;  %v393_v7 = vsel %vm137_vm2, 1.0, %v345_v4  ;;  %v408_v10 = vld [vmem:[%s544_s0 + $0x10] sm:$0xff]  ;;  %v419_v14 = vld [vmem:[%s544_s0 + $0x18] sm:$0xff] }
   0x4   :  { %v236_v11 = vsel %vm203_vm3, %v387_v5, 0.0  ;;  %v237_v12 = vsel %vm203_vm3, %v390_v6, 0.0  ;;  %v239_v13 = vsel %vm203_vm3, %v393_v7, 0.0 }
   0x5   :  { %7 = vsyncpa [#allocation3], 0  ;;  %v422_v15 = vsel %vm138_vm4, 1.0, %v345_v4  ;;  %v238_v16 = vadd.f32 %v237_v12, %v236_v11  ;;  %v43_v18 = vand.u32 2147483647, %v398_v8  ;;  %v159_v40 = vsub.f32 1.0, %v365_v0 }
   0x6   :  { %v241_v17 = vsel %vm203_vm3, %v422_v15, 0.0  ;;  %v44_v19 = vand.u32 2147483647, %v403_v9  ;;  %v45_v21 = vand.u32 2147483647, %v408_v10  ;;  %v160_v41 = vsub.f32 1.0, %v370_v1 }
   0x7   :  { %v240_v20 = vadd.f32 %v239_v13, %v238_v16  ;;  %v46_v22 = vand.u32 2147483647, %v419_v14  ;;  %v47_v23 = vsub.f32 0.0, %v43_v18  ;;  %v161_v42 = vsub.f32 1.0, %v375_v2  ;;  %s346_s26 = smov [#allocation2]  }
   0x8   :  { %v48_v24 = vsub.f32 0.0, %v44_v19  ;;  %v49_v26 = vsub.f32 0.0, %v45_v21  ;;  %v162_v43 = vsub.f32 1.0, %v380_v3  ;;  %v163_v44 = vmul.f32 %v159_v40, %v159_v40  ;;  %s273_s27 = sshll.u32 %s346_s26, 4  ;;  %s274_s27 = int_to_ptr.vmem [resolvable:$true] %s273_s27 }
   0x9   :  { %v242_v25 = vadd.f32 %v241_v17, %v240_v20  ;;  %v50_v27 = vsub.f32 0.0, %v46_v22  ;;  %v51_v28 = vmul.f32 1.442695, %v47_v23  ;;  %v164_v45 = vmul.f32 %v160_v41, %v160_v41  ;;  %s321_s28 = scalar_lea.vmem %s274_s27, 16  ;;  %s325_s29 = scalar_lea.vmem %s274_s27, 32 }
   0xa   :  { %v53_v29 = vmul.f32 1.442695, %v48_v24  ;;  %v55_v30 = vmul.f32 1.442695, %v49_v26  ;;  %v165_v46 = vmul.f32 %v161_v42, %v161_v42  ;;  %v434_v48 = vmul.f32 %v162_v43, %v162_v43  ;;  %p322_p0 = scmp.ne.s32.totalorder %s274_s27, %s321_s28  ;;  %p326_p1 = scmp.lt.s32.totalorder %s274_s27, %s274_s27 }
   0xb   :  { %243 = vadd.xlane.f32.xlu1 %v242_v25  ;;  %v57_v31 = vmul.f32 1.442695, %v50_v27  ;;  %297 = vpow2.f32 %v51_v28  ;;  %vm67_vm5 = vcmp.ge.f32.partialorder %v398_v8, 0.0  ;;  %vm68_vm6 = vcmp.ge.f32.partialorder %v403_v9, 0.0  ;;  %p327_p2 = scmp.lt.s32.totalorder %s325_s29, %s321_s28 }
   0xc   :  { %299 = vpow2.f32 %v53_v29  ;;  %vm147_vm7 = vcmp.lt.f32.partialorder %v365_v0, 1.0  ;;  %vm69_vm8 = vcmp.ge.f32.partialorder %v408_v10, 0.0  ;;  %vm70_vm9 = vcmp.ge.f32.partialorder %v419_v14, 0.0 }
   0xd   :  { %301 = vpow2.f32 %v55_v30  ;;  %v115_v51 = vsub.f32 0.0, %v398_v8  ;;  %v116_v54 = vsub.f32 0.0, %v403_v9  ;;  %v117_v55 = vsub.f32 0.0, %v408_v10  ;;  %p328_p3 = por %p327_p2, %p326_p1 }
   0xe   :  { %303 = vpow2.f32 %v57_v31  ;;  %v118_v56 = vsub.f32 0.0, %v419_v14  ;;  %v448_v60 = vsel %vm147_vm7, 1.0, %v345_v4  ;;  %v450_v61 = vmul.f32 %v163_v44, %v163_v44 }
   0xf   :  { %v454_v12 = vmul.f32 %v164_v45, %v164_v45  ;;  %v458_v19 = vmul.f32 %v165_v46, %v165_v46  ;;  %vm148_vm10 = vcmp.lt.f32.partialorder %v370_v1, 1.0  ;;  %vm149_vm11 = vcmp.lt.f32.partialorder %v375_v2, 1.0  ;;  %p329_p4 = pnand %p328_p3, %p322_p0 }
  0x10   :  { %vm150_vm12 = vcmp.lt.f32.partialorder %v380_v3, 1.0  ;;  %vm265_vm0 = vcmask 16384  }
  0x15   :  { %v298_v32 = vpop.eup %297 }
  0x16   :  { %v300_v33 = vpop.eup %299  ;;  %v59_v34 = vadd.f32 1.0, %v298_v32 }
  0x17   :  { %v302_v35 = vpop.eup %301  ;;  %v60_v36 = vadd.f32 1.0, %v300_v33 }
  0x18   :  { %v304_v37 = vpop.eup %303  ;;  %v61_v38 = vadd.f32 1.0, %v302_v35  ;;  %305 = vrcp.f32 %v59_v34 }
  0x19   :  { %v62_v39 = vadd.f32 1.0, %v304_v37  ;;  %307 = vrcp.f32 %v60_v36 }
  0x1a   :  { %309 = vrcp.f32 %v61_v38 }
  0x1b   :  { %311 = vrcp.f32 %v62_v39 }
  0x1c   :  { %313 = vlog2.f32 %v59_v34 }
  0x1d   :  { %315 = vlog2.f32 %v60_v36 }
  0x1e   :  { %317 = vlog2.f32 %v61_v38 }
  0x1f   :  { %319 = vlog2.f32 %v62_v39 }
  0x22   :  { %v306_v47 = vpop.eup %305 }
  0x23   :  { %v308_v49 = vpop.eup %307  ;;  %v71_v50 = vmul.f32 %v306_v47, %v298_v32 }
  0x24   :  { %v310_v52 = vpop.eup %309  ;;  %v72_v53 = vmul.f32 %v308_v49, %v300_v33 }
  0x25   :  { %v312_v57 = vpop.eup %311  ;;  %v73_v58 = vmul.f32 %v310_v52, %v302_v35  ;;  %v75_v59 = vsel %vm67_vm5, %v306_v47, %v71_v50 }
  0x26   :  { %v314_v62 = vpop.eup %313  ;;  %v74_v63 = vmul.f32 %v312_v57, %v304_v37  ;;  %v76_v0 = vsel %vm68_vm6, %v308_v49, %v72_v53  ;;  %v79_v11 = vmax.f32 %v75_v59, 0.0001 }
  0x27   :  { %v316_v13 = vpop.eup %315  ;;  %v77_v16 = vsel %vm69_vm8, %v310_v52, %v73_v58  ;;  %v80_v17 = vmax.f32 %v76_v0, 0.0001  ;;  %v88_v18 = vmul.f32 0.6931472, %v314_v62 }
  0x28   :  { %v318_v20 = vpop.eup %317  ;;  %v78_v21 = vsel %vm70_vm9, %v312_v57, %v74_v63  ;;  %v81_v22 = vmax.f32 %v77_v16, 0.0001  ;;  %v462_v23 = vmin.f32 %v79_v11, 0.9999  ;;  %v90_v24 = vmul.f32 0.6931472, %v316_v13 }
  0x29   :  { %v320_v25 = vpop.eup %319  ;;  %v82_v26 = vmax.f32 %v78_v21, 0.0001  ;;  %v464_v27 = vmin.f32 %v80_v17, 0.9999  ;;  %v92_v28 = vmul.f32 0.6931472, %v318_v20  ;;  %v99_v29 = vsub.f32 %v398_v8, %v88_v18 }
  0x2a   :  { %v467_v30 = vmin.f32 %v81_v22, 0.9999  ;;  %v94_v31 = vmul.f32 0.6931472, %v320_v25  ;;  %v95_v32 = vsub.f32 0.0, %v88_v18  ;;  %v96_v33 = vsub.f32 0.0, %v90_v24 }
  0x2b   :  { %v469_v34 = vmin.f32 %v82_v26, 0.9999  ;;  %v97_v35 = vsub.f32 0.0, %v92_v28  ;;  %v100_v36 = vsub.f32 %v403_v9, %v90_v24  ;;  %v101_v37 = vsub.f32 %v408_v10, %v92_v28 }
  0x2c   :  { %v98_v38 = vsub.f32 0.0, %v94_v31  ;;  %v102_v39 = vsub.f32 %v419_v14, %v94_v31  ;;  %v103_v40 = vsel %vm67_vm5, %v95_v32, %v99_v29  ;;  %v171_v41 = vsub.f32 1.0, %v462_v23 }
  0x2d   :  { %v104_v42 = vsel %vm68_vm6, %v96_v33, %v100_v36  ;;  %v105_v43 = vsel %vm69_vm8, %v97_v35, %v101_v37  ;;  %v107_v44 = vmax.f32 %v103_v40, -9.2103405  ;;  %v172_v45 = vsub.f32 1.0, %v464_v27 }
  0x2e   :  { %v106_v46 = vsel %vm70_vm9, %v98_v38, %v102_v39  ;;  %v108_v47 = vmax.f32 %v104_v42, -9.2103405  ;;  %v109_v49 = vmax.f32 %v105_v43, -9.2103405  ;;  %v173_v50 = vsub.f32 1.0, %v467_v30 }
  0x2f   :  { %v110_v52 = vmax.f32 %v106_v46, -9.2103405  ;;  %v111_v53 = vmin.f32 %v107_v44, -0.000100005  ;;  %v174_v57 = vsub.f32 1.0, %v469_v34  ;;  %v119_v58 = vsub.f32 %v115_v51, %v88_v18 }
  0x30   :  { %v112_v59 = vmin.f32 %v108_v47, -0.000100005  ;;  %v113_v62 = vmin.f32 %v109_v49, -0.000100005  ;;  %v120_v63 = vsub.f32 %v116_v54, %v90_v24  ;;  %v121_v0 = vsub.f32 %v117_v55, %v92_v28 }
  0x31   :  { %v114_v11 = vmin.f32 %v110_v52, -0.000100005  ;;  %v175_v13 = vmul.f32 %v171_v41, %v111_v53  ;;  %v122_v16 = vsub.f32 %v118_v56, %v94_v31  ;;  %v123_v17 = vsel %vm67_vm5, %v119_v58, %v95_v32 }
  0x32   :  { %v176_v20 = vmul.f32 %v172_v45, %v112_v59  ;;  %v177_v21 = vmul.f32 %v173_v50, %v113_v62  ;;  %v124_v51 = vsel %vm68_vm6, %v120_v63, %v96_v33  ;;  %v125_v18 = vsel %vm69_vm8, %v121_v0, %v97_v35 }
  0x33   :  { %v178_v54 = vmul.f32 %v174_v57, %v114_v11  ;;  %v179_v55 = vmul.f32 %v175_v13, %v171_v41  ;;  %v126_v22 = vsel %vm70_vm9, %v122_v16, %v98_v38  ;;  %v127_v24 = vmax.f32 %v123_v17, -9.2103405 }
  0x34   :  { %v180_v56 = vmul.f32 %v176_v20, %v172_v45  ;;  %v181_v25 = vmul.f32 %v177_v21, %v173_v50  ;;  %v128_v8 = vmax.f32 %v124_v51, -9.2103405  ;;  %v129_v26 = vmax.f32 %v125_v18, -9.2103405 }
  0x35   :  { %v182_v28 = vmul.f32 %v178_v54, %v174_v57  ;;  %v183_v29 = vmul.f32 %v387_v5, %v179_v55  ;;  %v130_v31 = vmax.f32 %v126_v22, -9.2103405  ;;  %v131_v32 = vmin.f32 %v127_v24, -0.000100005 }
  0x36   :  { %v184_v9 = vmul.f32 %v390_v6, %v180_v56  ;;  %v185_v10 = vmul.f32 %v393_v7, %v181_v25  ;;  %v132_v33 = vmin.f32 %v128_v8, -0.000100005  ;;  %v133_v35 = vmin.f32 %v129_v26, -0.000100005 }
  0x37   :  { %v186_v36 = vmul.f32 %v422_v15, %v182_v28  ;;  %v204_v14 = vsel %vm203_vm3, %v183_v29, 0.0  ;;  %v134_v37 = vmin.f32 %v130_v31, -0.000100005  ;;  %v187_v38 = vmul.f32 %v131_v32, %v462_v23 }
  0x38   :  { %v205_v39 = vsel %vm203_vm3, %v184_v9, 0.0  ;;  %v207_v40 = vsel %vm203_vm3, %v185_v10, 0.0  ;;  %v188_v5 = vmul.f32 %v132_v33, %v464_v27  ;;  %v189_v41 = vmul.f32 %v133_v35, %v467_v30 }
  0x39   :  { %v206_v6 = vadd.f32 %v205_v39, %v204_v14  ;;  %v170_v7 = vmul.f32 %v434_v48, %v434_v48  ;;  %v190_v42 = vmul.f32 %v134_v37, %v469_v34  ;;  %v191_v15 = vmul.f32 %v187_v38, %v462_v23 }
  0x3a   :  { %v209_v43 = vsel %vm203_vm3, %v186_v36, 0.0  ;;  %v286_v44 = vsel %vm148_vm10, 1.0, %v345_v4  ;;  %v192_v45 = vmul.f32 %v188_v5, %v464_v27  ;;  %v193_v46 = vmul.f32 %v189_v41, %v467_v30 }
  0x3b   :  { %v208_v47 = vadd.f32 %v207_v40, %v206_v6  ;;  %v287_v49 = vsel %vm149_vm11, 1.0, %v345_v4  ;;  %v194_v48 = vmul.f32 %v190_v42, %v469_v34  ;;  %v195_v50 = vmul.f32 %v191_v15, %v450_v61 }
  0x3c   :  { %v288_v23 = vsel %vm150_vm12, 1.0, %v345_v4  ;;  %v196_v1 = vmul.f32 %v192_v45, %v454_v12  ;;  %v197_v52 = vmul.f32 %v193_v46, %v458_v19  ;;  %v252_v29 = vlaneseq }
  0x3d   :  { %v210_v27 = vadd.f32 %v209_v43, %v208_v47  ;;  %v198_v53 = vmul.f32 %v194_v48, %v170_v7  ;;  %v199_v30 = vmul.f32 %v448_v60, %v195_v50 }
  0x3e   :  { %v200_v57 = vmul.f32 %v286_v44, %v196_v1  ;;  %v201_v58 = vmul.f32 %v287_v49, %v197_v52  ;;  %v253_v31 = vand.u32 127, %v252_v29 }
  0x3f   :  { %211 = vadd.xlane.f32.xlu0 %v210_v27  ;;  %v202_v2 = vmul.f32 %v288_v23, %v198_v53  ;;  %v220_v34 = vsel %vm203_vm3, %v199_v30, 0.0 }
  0x40   :  { %v221_v61 = vsel %vm203_vm3, %v200_v57, 0.0  ;;  %v223_v59 = vsel %vm203_vm3, %v201_v58, 0.0  ;;  %vm254_vm13 = vcmp.eq.s32.totalorder %v253_v31, 0  ;;  %vm257_vm14 = vcmp.eq.s32.totalorder %v253_v31, 1 }
  0x41   :  { %v222_v3 = vadd.f32 %v221_v61, %v220_v34  ;;  %v225_v4 = vsel %vm203_vm3, %v202_v2, 0.0  ;;  %vm261_vm15 = vcmp.eq.s32.totalorder %v253_v31, 2 }
  0x43   :  { %v224_v12 = vadd.f32 %v223_v59, %v222_v3 }
  0x45   :  { %v226_v62 = vadd.f32 %v225_v4, %v224_v12 }
  0x47   :  { %227 = vadd.xlane.f32.xlu0 %v226_v62 }
  0x98   :  { %v244_v19 = vpop.xlane.xlu1 %243 }
  0x99   :  { %v245_v63 = vrot.slane %v244_v19, 4 }
  0x9b   :  { %v246_v13 = vadd.f32 %v245_v63, %v244_v19 }
  0x9d   :  { %v247_v20 = vrot.slane %v246_v13, 2 }
  0x9f   :  { %v248_v22 = vadd.f32 %v247_v20, %v246_v13 }
  0xa1   :  { %v249_v25 = vrot.slane %v248_v22, 1 }
  0xa3   :  { %v250_v28 = vadd.f32 %v249_v25, %v248_v22 }
  0xcc   :  { %v212_v0 = vpop.xlane.xlu0 %211 }
  0xcd   :  { %v213_v60 = vrot.slane %v212_v0, 4 }
  0xcf   :  { %v214_v11 = vadd.f32 %v213_v60, %v212_v0 }
  0xd1   :  { %v215_v16 = vrot.slane %v214_v11, 2 }
  0xd3   :  { %v216_v17 = vadd.f32 %v215_v16, %v214_v11 }
  0xd4   :  { %v228_v21 = vpop.xlane.xlu0 %227 }
  0xd5   :  { %v229_v51 = vrot.slane %v228_v21, 4  ;;  %v217_v18 = vrot.slane %v216_v17, 1 }
  0xd7   :  { %v230_v54 = vadd.f32 %v229_v51, %v228_v21  ;;  %v218_v55 = vadd.f32 %v217_v18, %v216_v17 }
  0xd9   :  { %v231_v24 = vrot.slane %v230_v54, 2  ;;  %289 = vpush %v218_v55 }
  0xdb   :  { %v232_v56 = vadd.f32 %v231_v24, %v230_v54 }
  0xdd   :  { %v233_v8 = vrot.slane %v232_v56, 1 }
  0xdf   :  { %v234_v26 = vadd.f32 %v233_v8, %v232_v56 }
  0xe1   :  { %291 = vpush %v234_v26 }
  0xe2   :  { %293 = vpush %v250_v28 }
 0x10a   :  { %s290_s0 = spop %289 }
 0x10b   :  { %v255_v32 = vstv %s290_s0 }
 0x10c   :  { %v256_v10 = vsel %vm254_vm13, %v255_v32, 0.0 }
 0x112   :  { %s292_s24 = spop %291 }
 0x113   :  { %v258_v9 = vstv %s292_s24  ;;  %s294_s25 = spop %293 }
 0x114   :  { %v259_v33 = vsel %vm257_vm14, %v258_v9, 0.0  ;;  %v262_v35 = vstv %s294_s25 }
 0x115   :  { %v260_v36 = vadd.f32 %v259_v33, %v256_v10  ;;  %v263_v14 = vsel %vm261_vm15, %v262_v35, 0.0 }
 0x117   :  { %v264_v37 = vadd.f32 %v263_v14, %v260_v36 }
 0x119   :  { %266 = vst.msk [vmem:[#allocation2] sm:$0x1] %vm265_vm0, %v264_v37 }
 0x11a   :  { %332 = shalt.err (!%p329_p4)
}
 0x11b   :  { %s333_s4 = scalar_lea.hbm %s546_s2, 16 }
 0x11c   :  { %p334_p5 = scmp.ne.s32.totalorder %s546_s2, %s333_s4  ;;  %p337_p6 = scmp.lt.u32.totalorder %s333_s4, %s546_s2 }
 0x11e   :  { %p339_p7 = pnand %p337_p6, %p334_p5 }
 0x120   :  { %342 = shalt.err (!%p339_p7)
}
 0x121   :  { %276 = dma.vmem_to_hbm [thread:$0]  %s274_s27, 16, %s546_s2, [#allocation3]  }
 0x122   :  { %343 = dma.done.wait [#allocation3], 16  }
 0x123   :  { %344 = vsyncadd [#allocation3], 4294967280 }
 0x124   :  { %280 = vsyncpa [#allocation3], 1 }

</bundles_post_ra>
